<compile_context>
chip_gen: v5e
topology: v5e:2x2
jax: 0.10.0
libtpu: 0.0.40
codegen_flags: <defaults>
</compile_context>

<pallas_src>
import functools
import math

import jax
import jax.numpy as jnp
from jax.experimental import pallas as pl
from jax.experimental.pallas import tpu as pltpu

F32 = jnp.float32
BF16 = jnp.bfloat16


# --------------------- feature probe: single-buffered constant blocks ---------------------

_BUFFERED1_OK = None


def _single_buffer_supported():
    """Probe whether pipeline_mode=pl.Buffered(1) works in this JAX/Mosaic build.

    Buffered(1) on constant-index weight blocks halves their VMEM footprint (they
    are DMA'd once, so double-buffering buys nothing).  If the probe fails we fall
    back to default double-buffering instead of failing the real kernel.
    """
    global _BUFFERED1_OK
    if _BUFFERED1_OK is None:
        try:
            def _copy(x_ref, o_ref):
                o_ref[...] = x_ref[...]

            probe = pl.pallas_call(
                _copy,
                grid=(2,),
                in_specs=[pl.BlockSpec((8, 128), lambda i: (0, 0),
                                       pipeline_mode=pl.Buffered(1))],
                out_specs=pl.BlockSpec((8, 128), lambda i: (0, 0)),
                out_shape=jax.ShapeDtypeStruct((8, 128), F32),
            )
            jax.block_until_ready(probe(jnp.zeros((8, 128), F32)))
            _BUFFERED1_OK = True
        except Exception:  # pragma: no cover - depends on the JAX/Mosaic build
            _BUFFERED1_OK = False
    return _BUFFERED1_OK


# ----------------------------------- Pallas kernel -----------------------------------

def _grounding_kernel(t_ref, i_ref, wq_ref, bq_ref, wk_ref, bk_ref, m_ref,
                      o_ref, *scratch, scale, num_heads, dh, cache_k):
    """One grid step = (batch element b, text tile t).

    t_ref : (1, tq, HT)  native dtype (f32/bf16) text encodings tile
    i_ref : (1, R,  HI)  native dtype image/ROI encodings (whole batch element)
    wq/bq : (HT, A) bf16 / (1, A) f32
    wk/bk : (HI, A) bf16 / (1, A) f32
    m_ref : (1, 1, R)    f32 additive per-ROI mask (broadcast over T)
    o_ref : (1, heads, tq, R)  logits block, written directly in (T, R) order
    scratch (only if cache_k): k_sc (heads, R, dh) bf16 head-major K cache
    """
    tq = o_ref.shape[2]
    r = o_ref.shape[3]

    def project_k():
        # (R, HI) @ (HI, A): bf16 MXU operands, f32 accumulation, f32 bias add.
        # The 1/sqrt(dh) scale is folded into K once (identical to scaling the
        # logits), then rounded to bf16 per head (head-major split so the per-tile
        # head loop never lane-slices across (8,128) tile boundaries).
        k = jnp.dot(i_ref[0].astype(BF16), wk_ref[...],
                    preferred_element_type=F32) + bk_ref[...]
        k = k * scale
        return [k[:, h * dh:(h + 1) * dh].astype(BF16) for h in range(num_heads)]

    if cache_k:
        # NOTE: caching is only valid because the wrapper marks the T grid axis
        # "arbitrary" (sequential, innermost) whenever cache_k=True.
        k_sc = scratch[0]

        @pl.when(pl.program_id(1) == 0)
        def _():
            k_list = project_k()
            for h in range(num_heads):
                k_sc[h] = k_list[h]

        k_heads = [k_sc[h] for h in range(num_heads)]
    else:
        # Megacore-friendly variant (small B): recompute the cheap K projection
        # per T tile so both grid axes can be "parallel".
        k_heads = project_k()

    # Q projection for this tile: bf16 MXU operands, f32 accumulation + bias,
    # rounded to bf16 for the logits matmul.
    q = jnp.dot(t_ref[0].astype(BF16), wq_ref[...],
                preferred_element_type=F32) + bq_ref[...]
    qb = q.astype(BF16)                                       # (tq, A)

    # Hoist the mask broadcast out of the head loop (JAX does not CSE it).
    m = jnp.broadcast_to(m_ref[0], (tq, r))                   # (tq, R) f32

    for h in range(num_heads):                                # static unroll
        # TODO(synk): for num_heads > 1 with dh % 128 != 0 this lane slice of Q
        # relayouts per head/tile; pad dh to 128 (or project Q head-major) if
        # that configuration is ever used.  Module default heads=1 -> no-op.
        qh = qb[:, h * dh:(h + 1) * dh]                       # (tq, dh)
        logits = jax.lax.dot_general(qh, k_heads[h],          # (tq,dh) x (R,dh)^T
                                     (((1,), (1,)), ((), ())),
                                     preferred_element_type=F32)
        o_ref[0, h] = (logits + m).astype(o_ref.dtype)


# ----------------------------------- sizing helpers -----------------------------------

def _rup(x, m):
    return -(-int(x) // m) * m


def _vmem_bytes(tq, *, HT, HI, A, R, num_heads, dh, t_bytes, i_bytes, o_bytes,
                cache_k, single_buffer):
    """Rough padded VMEM footprint (bytes) of one grid step incl. pipeline buffers."""
    wbuf = 1 if single_buffer else 2
    total = 0
    total += 2 * _rup(tq, 8) * _rup(HT, 128) * t_bytes                 # encT tile x2
    total += 2 * _rup(R, 8) * _rup(HI, 128) * i_bytes                  # encI block x2
    total += wbuf * _rup(HT, 8) * _rup(A, 128) * 2                     # Wq (bf16)
    total += wbuf * _rup(HI, 8) * _rup(A, 128) * 2                     # Wk (bf16)
    total += 2 * wbuf * 8 * _rup(A, 128) * 4                           # bq, bk
    total += 2 * 8 * _rup(R, 128) * 4                                  # mask x2
    total += 2 * num_heads * _rup(tq, 8) * _rup(R, 128) * o_bytes      # out tile x2
    if cache_k:
        total += num_heads * _rup(R, 8) * _rup(dh, 128) * 2            # K cache
    return int(total * 1.25)                                           # relayout fudge


def _pick_t_tile(T, vmem_fn, budget):
    """Largest lane-dense T tile (multiple of 128) whose working set fits `budget`."""
    cands = [c for c in (1024, 512, 256, 128) if T % c == 0]
    if not cands:
        return T                      # small/odd T: one tile covering all of T
    for c in cands:
        if vmem_fn(c) <= budget:
            return c
    return cands[-1]


# ------------------------------------- wrapper -------------------------------------

def grounding(encT, encI, mask, wq, bq, wk, bk, *, num_heads=1, tq=None,
              cache_k=None, out_dtype=F32, vmem_budget_bytes=40 << 20):
    """Pallas implementation of Grounding.forward(encT, encI, mask).

    mask: additive per-ROI mask; accepted shapes (B, R), (B, 1, R) or (B, 1, 1, R)
    (the extended mask BertForGrounding builds).  Set out_dtype=jnp.bfloat16 if the
    consumer tolerates it (halves logits writeback traffic).
    """
    B, T, HT = encT.shape
    Bi, R, HI = encI.shape
    assert B == Bi, (encT.shape, encI.shape)
    HT_w, A = wq.shape
    assert HT_w == HT and wk.shape == (HI, A), (wq.shape, wk.shape)
    assert A % num_heads == 0
    dh = A // num_heads
    scale = 1.0 / math.sqrt(dh)

    # K caching across T tiles requires the T axis to be sequential.  For small
    # batches (v7x megacore: B < number of TensorCores worth of work) recompute
    # the cheap K projection per tile instead and mark BOTH axes "parallel":
    # ~20% extra MXU work beats a 50% idle core.
    if cache_k is None:
        cache_k = B >= 2

    single_buffer = _single_buffer_supported()

    vmem_fn = functools.partial(
        _vmem_bytes, HT=HT, HI=HI, A=A, R=R, num_heads=num_heads, dh=dh,
        t_bytes=encT.dtype.itemsize, i_bytes=encI.dtype.itemsize,
        o_bytes=jnp.dtype(out_dtype).itemsize,
        cache_k=cache_k, single_buffer=single_buffer)
    if tq is None:
        tq = _pick_t_tile(T, vmem_fn, vmem_budget_bytes)
    assert T % tq == 0
    nT = T // tq

    # Weights -> bf16 for the MXU (tiny one-off convert; store params bf16 in a
    # real model).  Activations stay in their native dtype and are cast per-tile
    # inside the kernel: a wrapper-side encT/encI convert would be a separate
    # un-fused HBM read+write pass larger than the kernel's own footprint.
    wq16 = wq.astype(BF16)
    wk16 = wk.astype(BF16)
    bq2 = bq.reshape(1, A).astype(F32)
    bk2 = bk.reshape(1, A).astype(F32)

    mask = jnp.asarray(mask, F32)
    if mask.shape == (B, R):
        mask3 = mask.reshape(B, 1, R)
    elif mask.shape == (B, 1, R):
        mask3 = mask
    elif mask.shape == (B, 1, 1, R):
        mask3 = mask.reshape(B, 1, R)
    else:
        # TODO(synk): masks varying along the text axis T are not supported by
        # this layout; BertForGrounding only passes the (B, 1, 1, R) ROI mask.
        raise ValueError(f"unsupported mask shape {mask.shape}; expected a "
                         f"per-ROI additive mask broadcast over T")

    def const_spec(shape):
        # Constant index_map -> DMA'd once; single-buffer when supported.
        if single_buffer:
            return pl.BlockSpec(shape, lambda b, t: (0, 0),
                                pipeline_mode=pl.Buffered(1))
        return pl.BlockSpec(shape, lambda b, t: (0, 0))

    in_specs = [
        pl.BlockSpec((1, tq, HT), lambda b, t: (b, t, 0)),    # encT tile
        pl.BlockSpec((1, R, HI), lambda b, t: (b, 0, 0)),     # encI (changes w/ b: keep 2 bufs)
        const_spec((HT, A)),                                  # Wq  (single buffer)
        const_spec((1, A)),                                   # bq
        const_spec((HI, A)),                                  # Wk  (single buffer)
        const_spec((1, A)),                                   # bk
        pl.BlockSpec((1, 1, R), lambda b, t: (b, 0, 0)),      # additive ROI mask
    ]

    scratch = [pltpu.VMEM((num_heads, R, dh), BF16)] if cache_k else []
    dim_sem = ("parallel", "arbitrary") if cache_k else ("parallel", "parallel")
    vmem_limit = int(min(64 << 20, max(vmem_fn(tq) + (8 << 20), 32 << 20)))

    out = pl.pallas_call(
        functools.partial(_grounding_kernel, scale=scale, num_heads=num_heads,
                          dh=dh, cache_k=cache_k),
        grid=(B, nT),
        in_specs=in_specs,
        out_specs=pl.BlockSpec((1, num_heads, tq, R), lambda b, t: (b, 0, t, 0)),
        out_shape=jax.ShapeDtypeStruct((B, num_heads, T, R), out_dtype),
        scratch_shapes=scratch,
        compiler_params=pltpu.CompilerParams(
            dimension_semantics=dim_sem,
            vmem_limit_bytes=vmem_limit),
    )(encT, encI, wq16, bq2, wk16, bk2, mask3)

    # Logits already in (B, heads, T, R) order -> just PyTorch's .squeeze().
    return jnp.squeeze(out)


# ------------------------------- pure-JAX reference -------------------------------

def grounding_reference(encT, encI, mask, wq, bq, wk, bk, *, num_heads=1):
    # Mirrors the kernel's bf16 operand rounding (inputs/weights) so the comparison
    # isolates kernel-only error; projections/logits themselves stay f32.
    eT = encT.astype(BF16).astype(F32)
    eI = encI.astype(BF16).astype(F32)
    wq32 = wq.astype(BF16).astype(F32)
    wk32 = wk.astype(BF16).astype(F32)
    B, T, _ = encT.shape
    _, R, _ = encI.shape
    A = wq.shape[1]
    dh = A // num_heads
    Q = jnp.einsum("bth,ha->bta", eT, wq32) + bq
    K = jnp.einsum("brh,ha->bra", eI, wk32) + bk
    Q = Q.reshape(B, T, num_heads, dh).transpose(0, 2, 1, 3)
    K = K.reshape(B, R, num_heads, dh).transpose(0, 2, 1, 3)
    logits = jnp.einsum("bhtd,bhrd->bhtr", Q, K) / math.sqrt(dh)
    logits = logits + jnp.asarray(mask, F32).reshape(B, 1, 1, R)
    return jnp.squeeze(logits)


# ------------------------------------- main -------------------------------------

if __name__ == "__main__":
    B, T, R = 2, 8, 4            # batch, text seq len, number of ROIs
    HT, HI = 32, 32              # cfgT.hidden_size, cfgI.hidden_size
    heads = 1                    # Grounding default
    A = ((HI // 2) // heads) * heads   # all_head_size

    key = jax.random.PRNGKey(0)
    k0, k1, k2, k3, k4, k5 = jax.random.split(key, 6)

    encT = jax.random.normal(k0, (B, T, HT), F32)
    encI = jax.random.normal(k1, (B, R, HI), F32)
    wq = 0.05 * jax.random.normal(k2, (HT, A), F32)
    bq = 0.02 * jax.random.normal(k3, (A,), F32)
    wk = 0.05 * jax.random.normal(k4, (HI, A), F32)
    bk = 0.02 * jax.random.normal(k5, (A,), F32)

    # ROI mask with one padded ROI, converted to the additive extended mask
    # exactly as BertForGrounding does before calling Grounding.
    roi_mask = jnp.ones((B, R), F32).at[1, R - 1].set(0.0)
    mask_add = ((1.0 - roi_mask) * -10000.0).reshape(B, 1, 1, R)

    ref = grounding_reference(encT, encI, mask_add, wq, bq, wk, bk, num_heads=heads)

    # Default path: K cached per batch element (T axis sequential).
    fwd = jax.jit(functools.partial(grounding, num_heads=heads))
    out = jax.block_until_ready(fwd(encT, encI, mask_add, wq, bq, wk, bk))
    assert out.shape == ref.shape == (B, T, R), (out.shape, ref.shape)
    assert bool(jnp.all(jnp.isfinite(out)))
    assert bool(jnp.allclose(out, ref, atol=3e-2, rtol=3e-2)), float(
        jnp.max(jnp.abs(out - ref)))

    # Megacore-friendly path (small B): K recomputed per tile, both axes parallel.
    fwd2 = jax.jit(functools.partial(grounding, num_heads=heads, cache_k=False))
    out2 = jax.block_until_ready(fwd2(encT, encI, mask_add, wq, bq, wk, bk))
    assert bool(jnp.allclose(out2, ref, atol=3e-2, rtol=3e-2)), float(
        jnp.max(jnp.abs(out2 - ref)))

    print("KERNEL_OK")
</pallas_src>

<mosaic_0001>
module attributes {stable_mosaic.version = 11 : i64} {
  func.func @_grounding_kernel(%arg0: i32, %arg1: i32, %arg2: memref<1x8x32xf32, #tpu.memory_space<vmem>>, %arg3: memref<1x4x32xf32, #tpu.memory_space<vmem>>, %arg4: memref<32x16xbf16, #tpu.memory_space<vmem>>, %arg5: memref<1x16xf32, #tpu.memory_space<vmem>>, %arg6: memref<32x16xbf16, #tpu.memory_space<vmem>>, %arg7: memref<1x16xf32, #tpu.memory_space<vmem>>, %arg8: memref<1x1x4xf32, #tpu.memory_space<vmem>>, %arg9: memref<1x1x8x4xf32, #tpu.memory_space<vmem>>, %arg10: memref<1x4x16xbf16, #tpu.memory_space<vmem>>) attributes {dimension_semantics = [#tpu.dimension_semantics<parallel>, #tpu.dimension_semantics<arbitrary>], iteration_bounds = array<i64: 2, 1>, scalar_prefetch = 0 : i64, scratch_operands = 1 : i64, tpu.core_type = #tpu.core_type<tc>, window_params = [{transform_indices = @transform_0, window_bounds = array<i64: 1, 8, 32>}, {transform_indices = @transform_1, window_bounds = array<i64: 1, 4, 32>}, {pipeline_mode = #tpu.pipeline_mode<synchronous>, transform_indices = @transform_2, window_bounds = array<i64: 32, 16>}, {pipeline_mode = #tpu.pipeline_mode<synchronous>, transform_indices = @transform_3, window_bounds = array<i64: 1, 16>}, {pipeline_mode = #tpu.pipeline_mode<synchronous>, transform_indices = @transform_4, window_bounds = array<i64: 32, 16>}, {pipeline_mode = #tpu.pipeline_mode<synchronous>, transform_indices = @transform_5, window_bounds = array<i64: 1, 16>}, {transform_indices = @transform_6, window_bounds = array<i64: 1, 1, 4>}, {transform_indices = @transform_7, window_bounds = array<i64: 1, 1, 8, 4>}]} {
    %c0_i32 = arith.constant 0 : i32
    %0 = arith.cmpi eq, %arg1, %c0_i32 : i32
    %1 = arith.extui %0 : i1 to i32
    %c0_i32_0 = arith.constant 0 : i32
    %2 = arith.cmpi ne, %1, %c0_i32_0 : i32
    scf.if %2 {
      %c0_18 = arith.constant 0 : index
      %c0_19 = arith.constant 0 : index
      %c0_20 = arith.constant 0 : index
      %23 = vector.load %arg3[%c0_18, %c0_19, %c0_20] : memref<1x4x32xf32, #tpu.memory_space<vmem>>, vector<1x4x32xf32>
      %24 = vector.shape_cast %23 : vector<1x4x32xf32> to vector<4x32xf32>
      %25 = arith.truncf %24 : vector<4x32xf32> to vector<4x32xbf16>
      %c0_21 = arith.constant 0 : index
      %c0_22 = arith.constant 0 : index
      %26 = vector.load %arg6[%c0_21, %c0_22] : memref<32x16xbf16, #tpu.memory_space<vmem>>, vector<32x16xbf16>
      %cst_23 = arith.constant dense<0.000000e+00> : vector<4x16xf32>
      %27 = tpu.matmul %25, %26, %cst_23 {dimension_numbers = #tpu.dot_dimension_numbers<[1], [0], [0], [1], [0, 0, 1, 1], [], []>} : vector<4x32xbf16>, vector<32x16xbf16>, vector<4x16xf32> -> vector<4x16xf32>
      %c0_24 = arith.constant 0 : index
      %c0_25 = arith.constant 0 : index
      %28 = vector.load %arg7[%c0_24, %c0_25] : memref<1x16xf32, #tpu.memory_space<vmem>>, vector<1x16xf32>
      %29 = vector.broadcast %28 : vector<1x16xf32> to vector<4x16xf32>
      %30 = arith.addf %27, %29 : vector<4x16xf32>
      %cst_26 = arith.constant 2.500000e-01 : f32
      %31 = vector.broadcast %cst_26 : f32 to vector<4x16xf32>
      %32 = arith.mulf %30, %31 : vector<4x16xf32>
      %33 = arith.truncf %32 : vector<4x16xf32> to vector<4x16xbf16>
      %c0_27 = arith.constant 0 : index
      %c0_28 = arith.constant 0 : index
      %c0_29 = arith.constant 0 : index
      %34 = vector.load %arg10[%c0_27, %c0_28, %c0_29] : memref<1x4x16xbf16, #tpu.memory_space<vmem>>, vector<1x4x16xbf16>
      %35 = vector.shape_cast %34 : vector<1x4x16xbf16> to vector<4x16xbf16>
      %36 = vector.shape_cast %33 : vector<4x16xbf16> to vector<1x4x16xbf16>
      tpu.vector_store %arg10[%c0_27, %c0_28, %c0_29], %36 {strides = array<i32>} : memref<1x4x16xbf16, #tpu.memory_space<vmem>>, vector<1x4x16xbf16>,
    } else {
    }
    %c0 = arith.constant 0 : index
    %c0_1 = arith.constant 0 : index
    %c0_2 = arith.constant 0 : index
    %3 = vector.load %arg10[%c0, %c0_1, %c0_2] : memref<1x4x16xbf16, #tpu.memory_space<vmem>>, vector<1x4x16xbf16>
    %4 = vector.shape_cast %3 : vector<1x4x16xbf16> to vector<4x16xbf16>
    %c0_3 = arith.constant 0 : index
    %c0_4 = arith.constant 0 : index
    %c0_5 = arith.constant 0 : index
    %5 = vector.load %arg2[%c0_3, %c0_4, %c0_5] : memref<1x8x32xf32, #tpu.memory_space<vmem>>, vector<1x8x32xf32>
    %6 = vector.shape_cast %5 : vector<1x8x32xf32> to vector<8x32xf32>
    %7 = arith.truncf %6 : vector<8x32xf32> to vector<8x32xbf16>
    %c0_6 = arith.constant 0 : index
    %c0_7 = arith.constant 0 : index
    %8 = vector.load %arg4[%c0_6, %c0_7] : memref<32x16xbf16, #tpu.memory_space<vmem>>, vector<32x16xbf16>
    %cst = arith.constant dense<0.000000e+00> : vector<8x16xf32>
    %9 = tpu.matmul %7, %8, %cst {dimension_numbers = #tpu.dot_dimension_numbers<[1], [0], [0], [1], [0, 0, 1, 1], [], []>} : vector<8x32xbf16>, vector<32x16xbf16>, vector<8x16xf32> -> vector<8x16xf32>
    %c0_8 = arith.constant 0 : index
    %c0_9 = arith.constant 0 : index
    %10 = vector.load %arg5[%c0_8, %c0_9] : memref<1x16xf32, #tpu.memory_space<vmem>>, vector<1x16xf32>
    %11 = vector.broadcast %10 : vector<1x16xf32> to vector<8x16xf32>
    %12 = arith.addf %9, %11 : vector<8x16xf32>
    %13 = arith.truncf %12 : vector<8x16xf32> to vector<8x16xbf16>
    %c0_10 = arith.constant 0 : index
    %c0_11 = arith.constant 0 : index
    %c0_12 = arith.constant 0 : index
    %14 = vector.load %arg8[%c0_10, %c0_11, %c0_12] : memref<1x1x4xf32, #tpu.memory_space<vmem>>, vector<1x1x4xf32>
    %15 = vector.shape_cast %14 : vector<1x1x4xf32> to vector<1x4xf32>
    %16 = vector.shape_cast %15 : vector<1x4xf32> to vector<1x4xf32>
    %17 = vector.broadcast %16 : vector<1x4xf32> to vector<8x4xf32>
    %cst_13 = arith.constant dense<0.000000e+00> : vector<8x4xf32>
    %18 = tpu.matmul %13, %4, %cst_13 {dimension_numbers = #tpu.dot_dimension_numbers<[1], [1], [0], [0], [0, 0, 1, 0], [], []>} : vector<8x16xbf16>, vector<4x16xbf16>, vector<8x4xf32> -> vector<8x4xf32>
    %19 = arith.addf %18, %17 : vector<8x4xf32>
    %c0_14 = arith.constant 0 : index
    %c0_15 = arith.constant 0 : index
    %c0_16 = arith.constant 0 : index
    %c0_17 = arith.constant 0 : index
    %20 = vector.load %arg9[%c0_14, %c0_15, %c0_16, %c0_17] : memref<1x1x8x4xf32, #tpu.memory_space<vmem>>, vector<1x1x8x4xf32>
    %21 = vector.shape_cast %20 : vector<1x1x8x4xf32> to vector<8x4xf32>
    %22 = vector.shape_cast %19 : vector<8x4xf32> to vector<1x1x8x4xf32>
    tpu.vector_store %arg9[%c0_14, %c0_15, %c0_16, %c0_17], %22 {strides = array<i32>} : memref<1x1x8x4xf32, #tpu.memory_space<vmem>>, vector<1x1x8x4xf32>,
    return
  }
  func.func @transform_0(%arg0: i32, %arg1: i32) -> (i32, i32, i32) {
    %c0_i32 = arith.constant 0 : i32
    %c0_i32_0 = arith.constant 0 : i32
    return %arg0, %arg1, %c0_i32 : i32, i32, i32
  }
  func.func @transform_1(%arg0: i32, %arg1: i32) -> (i32, i32, i32) {
    %c0_i32 = arith.constant 0 : i32
    %c0_i32_0 = arith.constant 0 : i32
    %c0_i32_1 = arith.constant 0 : i32
    return %arg0, %c0_i32, %c0_i32_0 : i32, i32, i32
  }
  func.func @transform_2(%arg0: i32, %arg1: i32) -> (i32, i32) {
    %c0_i32 = arith.constant 0 : i32
    %c0_i32_0 = arith.constant 0 : i32
    %c0_i32_1 = arith.constant 0 : i32
    return %c0_i32, %c0_i32_0 : i32, i32
  }
  func.func @transform_3(%arg0: i32, %arg1: i32) -> (i32, i32) {
    %c0_i32 = arith.constant 0 : i32
    %c0_i32_0 = arith.constant 0 : i32
    %c0_i32_1 = arith.constant 0 : i32
    return %c0_i32, %c0_i32_0 : i32, i32
  }
  func.func @transform_4(%arg0: i32, %arg1: i32) -> (i32, i32) {
    %c0_i32 = arith.constant 0 : i32
    %c0_i32_0 = arith.constant 0 : i32
    %c0_i32_1 = arith.constant 0 : i32
    return %c0_i32, %c0_i32_0 : i32, i32
  }
  func.func @transform_5(%arg0: i32, %arg1: i32) -> (i32, i32) {
    %c0_i32 = arith.constant 0 : i32
    %c0_i32_0 = arith.constant 0 : i32
    %c0_i32_1 = arith.constant 0 : i32
    return %c0_i32, %c0_i32_0 : i32, i32
  }
  func.func @transform_6(%arg0: i32, %arg1: i32) -> (i32, i32, i32) {
    %c0_i32 = arith.constant 0 : i32
    %c0_i32_0 = arith.constant 0 : i32
    %c0_i32_1 = arith.constant 0 : i32
    return %arg0, %c0_i32, %c0_i32_0 : i32, i32, i32
  }
  func.func @transform_7(%arg0: i32, %arg1: i32) -> (i32, i32, i32, i32) {
    %c0_i32 = arith.constant 0 : i32
    %c0_i32_0 = arith.constant 0 : i32
    %c0_i32_1 = arith.constant 0 : i32
    return %arg0, %c0_i32, %arg1, %c0_i32_0 : i32, i32, i32, i32
  }
}

</mosaic_0001>

<bundles_post_ra>
// kernel: grounding.1
= control target key start
LH: loop header
LB: loop body
LE: loop exit
PB: predicated region body
PF: predicated region fallthrough
CT: control target
= control target key end

     0   :  { %s670_s24 = smov 0   ;;  %s672_s25 = smov 0   ;;  %s736_s0 = inlined_call_operand.vmem [shape: f32[2,8,32], index: 0, kind: input, shape index: {}]   ;;  %s737_s1 = inlined_call_operand.vmem [shape: f32[2,4,32], index: 1, kind: input, shape index: {}]   ;;  %s738_s2 = inlined_call_operand.vmem [shape: bf16[32,16], index: 2, kind: input, shape index: {}]   ;;  %s739_s3 = inlined_call_operand.vmem [shape: f32[1,16], index: 3, kind: input, shape index: {}]   ;;  %s740_s4 = inlined_call_operand.vmem [shape: bf16[32,16], index: 4, kind: input, shape index: {}]   ;;  %s741_s5 = inlined_call_operand.vmem [shape: f32[1,16], index: 5, kind: input, shape index: {}]   ;;  %s742_s6 = inlined_call_operand.vmem [shape: f32[2,1,4], index: 6, kind: input, shape index: {}]   ;;  %s743_s7 = inlined_call_operand.vmem [shape: f32[2,1,8,4], index: 7, kind: output, shape index: {}]  }
   0x1   :  { %s674_s26 = smov 0  }
   0x2 LB: > { %s29_s27 = sadd.s32 1, %s624_s25  ;;  %p550_p0 = scmp.ge.s32.totalorder %s628_s26, 1  ;;  %s628_s26 = sphi %s674_s26, %s17_s26   ;;  %s624_s25 = sphi %s672_s25, %s745_s25   ;;  %s620_s24 = sphi %s670_s24, %s744_s24  }
   0x3   : > { %p31_p1 = scmp.ge.s32.totalorder %s29_s27, 2  ;;  %p272_p2 = scmp.lt.s32.totalorder %s628_s26, 3 }
   0x5   : > { %s747_s27 = smov (%p31_p1, %s29_s27), 0  ;;  %p273_p3 = pnand %p550_p0, %p272_p2 }
   0x6   : > { %p315_p4 = scmp.lt.s32.totalorder (!%p273_p3), %s620_s24, 1 }
   0x7   : > { %276 = sbr.rel (%p273_p3) target bundleno = 308 (0x134), region = 48 }
   0xc   : > { %v576_v0 = vld [vmem:[%s740_s4 + $0x8] sm:$0xff]  ;;  %v575_v2 = vld [vmem:[%s740_s4] sm:$0xff]  ;;  %s749_s24 = smov (!%p315_p4, %s620_s24), 1  ;;  %vm363_vm0 = vcmask 261120   ;;  %vm382_vm1 = vcmask 123904   ;;  %vm429_vm2 = vcmask 130048  }
   0xd   : > { %v578_v1 = vld [vmem:[%s738_s2 + $0x8] sm:$0xff]  ;;  %373 = vmatpush.bf16.msra.mxu0 %v576_v0  ;;  %v577_v3 = vld [vmem:[%s738_s2] sm:$0xff]  ;;  %s552_s13 = sshll.u32 %s749_s24, 2  ;;  %s551_s14 = sshll.u32 %s749_s24, 3  ;;  %vm449_vm3 = vcmask 31744  }
   0xe   : > { %417 = vmatpush.bf16.msra.mxu1 %v578_v1  ;;  %s325_s17 = scalar_lea.vmem %s737_s1, %s552_s13  ;;  %s321_s20 = scalar_lea.vmem %s736_s0, %s551_s14  ;;  %v603_v8 = vld [vmem:[%s741_s5] ss:$0 sm:$0xff] }
   0xf   : > { %v341_v4 = vld [vmem:[%s325_s17] sm:$0xf]  ;;  %s328_s23 = scalar_lea.vmem %s742_s6, %s749_s24  ;;  %s335_s11 = scalar_lea.vmem %s743_s7, %s551_s14 }
  0x10   : > { %v385_v5 = vld [vmem:[%s321_s20] sm:$0xff]  ;;  %v342_v6 = vpack.c.bf16 %v341_v4, %v341_v4 }
  0x11   : > { %374 = vmatpush.bf16.msra.mxu0 %v575_v2  ;;  %v386_v7 = vpack.c.bf16 %v385_v5, %v385_v5  ;;  %v604_v16 = vld [vmem:[%s739_s3] ss:$0 sm:$0xff] }
  0x12   : > { %418 = vmatpush.bf16.msra.mxu1 %v577_v3  ;;  %v605_v21 = vld [vmem:[%s328_s23] ss:$0 sm:$0xff] }
  0x14   : > { %562 = vmatmul.msk.bf16.vlgmr.msra.gmra.mxu0 %vm363_vm0, %v342_v6 }
  0x15   : > { %571 = vmatmul.msk.bf16.vlgmr.msra.gmra.mxu1 %vm363_vm0, %v386_v7 }
  0x91   : > { %v376_v9 = vpop.f32.mrf.mxu0 }
  0x92   : > { %v420_v10 = vpop.f32.mrf.mxu1  ;;  %v377_v11 = vadd.f32 %v603_v8, %v376_v9 }
  0x93   : > { %v421_v18 = vadd.f32 %v604_v16, %v420_v10 }
  0x94   : > { %v380_v12 = vmul.f32 0.25, %v377_v11 }
  0x95   : > { %v424_v20 = vpack.c.bf16 %v421_v18, %v421_v18 }
  0x96   : > { %v381_v13 = vpack.c.bf16 %v380_v12, %v380_v12 }
  0x98   : > { %383 = vst.msk [vmem:[#allocation2] sm:$0x3] %vm382_vm1, %v381_v13 }
  0x99   : > { %v378_v14 = vpop.f32.mrf.mxu0 }
  0x9a   : > { %v422_v15 = vpop.f32.mrf.mxu1 }
  0x9f   : > { %v384_v17 = vld [vmem:[#allocation2] sm:$0x3] }
  0xa0   : > { %v434_v19 = vsel %vm429_vm2, %v384_v17, 0 }
  0xa1   : > { %443 = vmatpush.bf16.xpose.msra.mxu2 %v434_v19 }
  0xa8   : > { %572 = vmatmul.msk.bf16.vlgmr.msra.gmra.mxu2 %vm429_vm2, %v424_v20 }
 0x12b   : > { %v445_v22 = vpop.f32.mrf.mxu2 }
 0x12c   : > { %v446_v23 = vadd.f32 %v605_v21, %v445_v22 }
 0x12e   : > { %450 = vst.msk [vmem:[%s335_s11] sm:$0xff] %vm449_vm3, %v446_v23 }
 0x133   : > { %v447_v24 = vpop.f32.mrf.mxu2 }
 0x134 PF: > { %s17_s26 = sadd.s32 1, %s628_s26   ;;  %s744_s24 = smov %s624_s25 }
 0x135   : > { %p14_p5 = scmp.ge.s32.totalorder %s17_s26, 4   ;;  %s745_s25 = smov %s747_s27 }
 0x137   :  { %16 = sbr.rel (!%p14_p5) target bundleno = 2 (0x2), region = 88 }

</bundles_post_ra>
